<compile_context>
chip_gen: v7x
topology: tpu7x:2x2x1
jax: 0.10.0
libtpu: 0.0.40
codegen_flags: <defaults>
</compile_context>

<pallas_src>
import functools

import jax
import jax.numpy as jnp
from jax.experimental import pallas as pl
from jax.experimental.pallas import tpu as pltpu


def actor_critic_kernel(x_ref, w1_ref, b1_ref, wht_ref, bht_ref, out_ref, *,
                        action_dim, approx_recip):
    # Hidden layer: relu(x @ W1 + b1), MXU matmul with f32 accumulation.
    h = jnp.dot(x_ref[...], w1_ref[...], preferred_element_type=jnp.float32)
    h = jnp.maximum(h + b1_ref[...].astype(jnp.float32), 0.0)      # [tile_b, hidden]

    # Fused policy+value head, produced directly in the lane-dense transposed
    # orientation [out_dim, tile_b]:   Wh_t [out_dim, hidden]  (x)  h [tile_b, hidden]
    # contracting both on `hidden` (A @ B^T pattern -> no explicit transpose).
    fused_t = jax.lax.dot_general(
        wht_ref[...], h.astype(wht_ref.dtype),
        dimension_numbers=(((1,), (1,)), ((), ())),
        preferred_element_type=jnp.float32)                        # [out_dim, tile_b]
    fused_t = fused_t + bht_ref[...].astype(jnp.float32)           # bht: [out_dim, 1]

    # Softmax over the logit sublanes (rows 0..action_dim-1); the value row
    # (last sublane) passes through unchanged.  All elementwise work is
    # fully lane-packed; the reductions are cheap sublane (axis 0) reduces.
    row = jax.lax.broadcasted_iota(jnp.int32, fused_t.shape, 0)
    is_logit = row < action_dim
    m = jnp.max(jnp.where(is_logit, fused_t, -jnp.inf), axis=0, keepdims=True)
    e = jnp.where(is_logit, jnp.exp(fused_t - m), 0.0)             # mask folded into exp
    denom = jnp.sum(e, axis=0, keepdims=True)
    probs = e * pl.reciprocal(denom, approx=approx_recip)

    out_ref[...] = jnp.where(is_logit, probs, fused_t).astype(out_ref.dtype)


def _vmem_estimate_bytes(tile_b, state_dim, hidden, out_dim, in_itemsize):
    x_blk = 2 * tile_b * state_dim * in_itemsize        # double-buffered input block
    out_blk = 2 * 8 * tile_b * 4                        # out_dim padded to 8 sublanes
    h_tmp = tile_b * hidden * 4                         # hidden activations (f32)
    softmax_tmps = 4 * 8 * tile_b * 4                   # a few [out_dim_pad, tile_b] temps
    weights = (state_dim * hidden + hidden + out_dim * hidden + out_dim) * 4
    return x_blk + out_blk + h_tmp + softmax_tmps + weights


def actor_critic_forward_fused(state, w1, b1, wht, bht, *,
                               tile_b=8192, compute_dtype=None,
                               approx_reciprocal=None):
    """state: [B, state_dim]; wht: [action_dim+1, hidden]; bht: [action_dim+1, 1].

    Returns the fused, transposed output [action_dim+1, B] (lane-dense)."""
    B, state_dim = state.shape
    out_dim, hidden = wht.shape
    action_dim = out_dim - 1

    if approx_reciprocal is None:
        approx_reciprocal = compute_dtype is not None

    if compute_dtype is not None:
        # bf16 matmul inputs halve HBM traffic (dominant read); biases,
        # accumulation and softmax math stay f32 inside the kernel.
        state = state.astype(compute_dtype)
        w1 = w1.astype(compute_dtype)
        wht = wht.astype(compute_dtype)

    # Batch tile: one big block if it fits, else a multiple of 128 (lane axis
    # of the transposed output; also a multiple of 8 for the x sublane axis).
    if tile_b >= B:
        tile_b = B
    else:
        tile_b = max(128, (tile_b // 128) * 128)
    grid = (pl.cdiv(B, tile_b),)

    kernel = functools.partial(actor_critic_kernel,
                               action_dim=action_dim,
                               approx_recip=approx_reciprocal)

    def resident(shape):
        # Full block + constant index -> stays VMEM-resident across grid steps.
        return pl.BlockSpec(shape, lambda i: (0, 0))

    cp_kwargs = dict(dimension_semantics=("parallel",))
    est = _vmem_estimate_bytes(tile_b, state_dim, hidden, out_dim,
                               jnp.dtype(state.dtype).itemsize)
    if est > 12 * 1024 * 1024:
        # Raise the scoped-VMEM limit with headroom; cap at 48 MiB so it is
        # safe on every generation (v7x physical VMEM is 64 MiB per core).
        cp_kwargs["vmem_limit_bytes"] = int(min(est * 1.5 + (4 << 20), 48 << 20))

    fused_t = pl.pallas_call(
        kernel,
        out_shape=jax.ShapeDtypeStruct((out_dim, B), jnp.float32),
        grid=grid,
        in_specs=[
            pl.BlockSpec((tile_b, state_dim), lambda i: (i, 0)),
            resident(w1.shape),    # [state_dim, hidden]
            resident(b1.shape),    # [1, hidden]
            resident(wht.shape),   # [out_dim, hidden]
            resident(bht.shape),   # [out_dim, 1]
        ],
        out_specs=pl.BlockSpec((out_dim, tile_b), lambda i: (0, i)),
        compiler_params=pltpu.CompilerParams(**cp_kwargs),
    )(state, w1, b1, wht, bht)

    return fused_t


def actor_critic_forward(state, w1, b1, wht, bht, **kwargs):
    """Returns (action_probs [B, action_dim], value [B, 1])."""
    out_dim = wht.shape[0]
    action_dim = out_dim - 1
    fused_t = actor_critic_forward_fused(state, w1, b1, wht, bht, **kwargs)
    probs = fused_t[:action_dim, :].T        # [B, action_dim]
    value = fused_t[action_dim:, :].T        # [B, 1]
    return probs, value


def fuse_heads(wp, bp, wv, bv):
    """One-time (out-of-hot-loop) fusion of policy/value heads.
    wp: [hidden, A], bp: [1, A], wv: [hidden, 1], bv: [1, 1]."""
    wht = jnp.concatenate([wp, wv], axis=1).T        # [A+1, hidden]
    bht = jnp.concatenate([bp, bv], axis=1).T        # [A+1, 1]
    return wht, bht


def init_params(key, state_dim, action_dim, hidden_size=64):
    """Deterministic init mimicking PyTorch nn.Linear default (uniform +-1/sqrt(fan_in))."""
    ks = jax.random.split(key, 6)

    def linear(kw, kb, fan_in, fan_out):
        bound = 1.0 / jnp.sqrt(fan_in)
        w = jax.random.uniform(kw, (fan_in, fan_out), jnp.float32, -bound, bound)
        b = jax.random.uniform(kb, (1, fan_out), jnp.float32, -bound, bound)
        return w, b

    w1, b1 = linear(ks[0], ks[1], state_dim, hidden_size)
    wp, bp = linear(ks[2], ks[3], hidden_size, action_dim)
    wv, bv = linear(ks[4], ks[5], hidden_size, 1)
    return w1, b1, wp, bp, wv, bv


def reference_forward(state, w1, b1, wp, bp, wv, bv):
    h = jnp.maximum(state @ w1 + b1, 0.0)
    probs = jax.nn.softmax(h @ wp + bp, axis=-1)
    value = h @ wv + bv
    return probs, value


if __name__ == "__main__":
    key = jax.random.PRNGKey(0)
    k_state, k_params = jax.random.split(key)

    batch, state_dim, action_dim, hidden_size = 2, 8, 4, 64

    state = jax.random.normal(k_state, (batch, state_dim), jnp.float32)
    w1, b1, wp, bp, wv, bv = init_params(k_params, state_dim, action_dim, hidden_size)

    # Head fusion happens once, outside the per-call hot path.
    wht, bht = fuse_heads(wp, bp, wv, bv)

    probs_ref, value_ref = reference_forward(state, w1, b1, wp, bp, wv, bv)

    # --- Exact (f32) path: matches the PyTorch module at tight tolerance. ---
    probs, value = actor_critic_forward(state, w1, b1, wht, bht)
    jax.block_until_ready((probs, value))
    assert probs.shape == (batch, action_dim) and value.shape == (batch, 1)
    assert jnp.allclose(probs, probs_ref, atol=1e-5, rtol=1e-5)
    assert jnp.allclose(value, value_ref, atol=1e-5, rtol=1e-5)
    assert jnp.allclose(jnp.sum(probs, axis=-1), 1.0, atol=1e-5)

    # --- bf16 fast path (recommended production default on v5e/v6e/v7x):
    # halves HBM traffic; checked at a bf16-appropriate tolerance.
    probs_bf, value_bf = actor_critic_forward(state, w1, b1, wht, bht,
                                              compute_dtype=jnp.bfloat16)
    jax.block_until_ready((probs_bf, value_bf))
    assert jnp.allclose(probs_bf, probs_ref, atol=2e-2, rtol=2e-2)
    assert jnp.allclose(value_bf, value_ref, atol=2e-2, rtol=2e-2)
    assert jnp.allclose(jnp.sum(probs_bf, axis=-1), 1.0, atol=1e-3)

    print("KERNEL_OK")
</pallas_src>

<mosaic_0001>
module attributes {stable_mosaic.version = 11 : i64} {
  func.func @actor_critic_kernel(%arg0: i32, %arg1: memref<2x8xf32, #tpu.memory_space<vmem>>, %arg2: memref<8x64xf32, #tpu.memory_space<vmem>>, %arg3: memref<1x64xf32, #tpu.memory_space<vmem>>, %arg4: memref<5x64xf32, #tpu.memory_space<vmem>>, %arg5: memref<5x1xf32, #tpu.memory_space<vmem>>, %arg6: memref<5x2xf32, #tpu.memory_space<vmem>>) attributes {dimension_semantics = [#tpu.dimension_semantics<parallel>], iteration_bounds = array<i64: 1>, scalar_prefetch = 0 : i64, scratch_operands = 0 : i64, tpu.core_type = #tpu.core_type<tc>, window_params = [{transform_indices = @transform_0, window_bounds = array<i64: 2, 8>}, {pipeline_mode = #tpu.pipeline_mode<synchronous>, transform_indices = @transform_1, window_bounds = array<i64: 8, 64>}, {pipeline_mode = #tpu.pipeline_mode<synchronous>, transform_indices = @transform_2, window_bounds = array<i64: 1, 64>}, {pipeline_mode = #tpu.pipeline_mode<synchronous>, transform_indices = @transform_3, window_bounds = array<i64: 5, 64>}, {pipeline_mode = #tpu.pipeline_mode<synchronous>, transform_indices = @transform_4, window_bounds = array<i64: 5, 1>}, {transform_indices = @transform_5, window_bounds = array<i64: 5, 2>}]} {
    %c0 = arith.constant 0 : index
    %c0_0 = arith.constant 0 : index
    %0 = vector.load %arg1[%c0, %c0_0] : memref<2x8xf32, #tpu.memory_space<vmem>>, vector<2x8xf32>
    %c0_1 = arith.constant 0 : index
    %c0_2 = arith.constant 0 : index
    %1 = vector.load %arg2[%c0_1, %c0_2] : memref<8x64xf32, #tpu.memory_space<vmem>>, vector<8x64xf32>
    %cst = arith.constant dense<0.000000e+00> : vector<2x64xf32>
    %2 = tpu.matmul %0, %1, %cst {dimension_numbers = #tpu.dot_dimension_numbers<[1], [0], [0], [1], [0, 0, 1, 1], [], []>} : vector<2x8xf32>, vector<8x64xf32>, vector<2x64xf32> -> vector<2x64xf32>
    %c0_3 = arith.constant 0 : index
    %c0_4 = arith.constant 0 : index
    %3 = vector.load %arg3[%c0_3, %c0_4] : memref<1x64xf32, #tpu.memory_space<vmem>>, vector<1x64xf32>
    %4 = vector.broadcast %3 : vector<1x64xf32> to vector<2x64xf32>
    %5 = arith.addf %2, %4 : vector<2x64xf32>
    %cst_5 = arith.constant 0.000000e+00 : f32
    %6 = vector.broadcast %cst_5 : f32 to vector<2x64xf32>
    %7 = arith.maximumf %5, %6 : vector<2x64xf32>
    %c0_6 = arith.constant 0 : index
    %c0_7 = arith.constant 0 : index
    %8 = vector.load %arg4[%c0_6, %c0_7] : memref<5x64xf32, #tpu.memory_space<vmem>>, vector<5x64xf32>
    %cst_8 = arith.constant dense<0.000000e+00> : vector<5x2xf32>
    %9 = tpu.matmul %8, %7, %cst_8 {dimension_numbers = #tpu.dot_dimension_numbers<[1], [1], [0], [0], [0, 0, 1, 0], [], []>} : vector<5x64xf32>, vector<2x64xf32>, vector<5x2xf32> -> vector<5x2xf32>
    %c0_9 = arith.constant 0 : index
    %c0_10 = arith.constant 0 : index
    %10 = vector.load %arg5[%c0_9, %c0_10] : memref<5x1xf32, #tpu.memory_space<vmem>>, vector<5x1xf32>
    %11 = vector.broadcast %10 : vector<5x1xf32> to vector<5x2xf32>
    %12 = arith.addf %9, %11 : vector<5x2xf32>
    %13 = tpu.iota {dimensions = array<i32: 0>} : vector<5x2xi32>
    %c4_i32 = arith.constant 4 : i32
    %14 = vector.broadcast %c4_i32 : i32 to vector<5x2xi32>
    %15 = arith.cmpi slt, %13, %14 : vector<5x2xi32>
    %cst_11 = arith.constant 0xFF800000 : f32
    %16 = vector.broadcast %cst_11 : f32 to vector<5x2xf32>
    %17 = arith.select %15, %12, %16 : vector<5x2xi1>, vector<5x2xf32>
    %cst_12 = arith.constant dense<0xFF800000> : vector<2xf32>
    %18 = vector.multi_reduction <maximumf>, %17, %cst_12 [0] : vector<5x2xf32> to vector<2xf32>
    %19 = vector.shape_cast %18 : vector<2xf32> to vector<1x2xf32>
    %20 = vector.broadcast %19 : vector<1x2xf32> to vector<5x2xf32>
    %21 = arith.subf %12, %20 : vector<5x2xf32>
    %22 = math.exp %21 : vector<5x2xf32>
    %cst_13 = arith.constant 0.000000e+00 : f32
    %23 = vector.broadcast %cst_13 : f32 to vector<5x2xf32>
    %24 = arith.select %15, %22, %23 : vector<5x2xi1>, vector<5x2xf32>
    %cst_14 = arith.constant dense<0.000000e+00> : vector<2xf32>
    %25 = vector.multi_reduction <add>, %24, %cst_14 [0] : vector<5x2xf32> to vector<2xf32>
    %26 = vector.shape_cast %25 : vector<2xf32> to vector<1x2xf32>
    %27 = tpu.reciprocal %26 : vector<1x2xf32> -> vector<1x2xf32>
    %28 = vector.broadcast %27 : vector<1x2xf32> to vector<5x2xf32>
    %29 = arith.mulf %24, %28 : vector<5x2xf32>
    %30 = arith.select %15, %29, %12 : vector<5x2xi1>, vector<5x2xf32>
    %c0_15 = arith.constant 0 : index
    %c0_16 = arith.constant 0 : index
    %31 = vector.load %arg6[%c0_15, %c0_16] : memref<5x2xf32, #tpu.memory_space<vmem>>, vector<5x2xf32>
    tpu.vector_store %arg6[%c0_15, %c0_16], %30 {strides = array<i32>} : memref<5x2xf32, #tpu.memory_space<vmem>>, vector<5x2xf32>,
    return
  }
  func.func @transform_0(%arg0: i32) -> (i32, i32) {
    %c0_i32 = arith.constant 0 : i32
    %c0_i32_0 = arith.constant 0 : i32
    return %arg0, %c0_i32 : i32, i32
  }
  func.func @transform_1(%arg0: i32) -> (i32, i32) {
    %c0_i32 = arith.constant 0 : i32
    %c0_i32_0 = arith.constant 0 : i32
    %c0_i32_1 = arith.constant 0 : i32
    return %c0_i32, %c0_i32_0 : i32, i32
  }
  func.func @transform_2(%arg0: i32) -> (i32, i32) {
    %c0_i32 = arith.constant 0 : i32
    %c0_i32_0 = arith.constant 0 : i32
    %c0_i32_1 = arith.constant 0 : i32
    return %c0_i32, %c0_i32_0 : i32, i32
  }
  func.func @transform_3(%arg0: i32) -> (i32, i32) {
    %c0_i32 = arith.constant 0 : i32
    %c0_i32_0 = arith.constant 0 : i32
    %c0_i32_1 = arith.constant 0 : i32
    return %c0_i32, %c0_i32_0 : i32, i32
  }
  func.func @transform_4(%arg0: i32) -> (i32, i32) {
    %c0_i32 = arith.constant 0 : i32
    %c0_i32_0 = arith.constant 0 : i32
    %c0_i32_1 = arith.constant 0 : i32
    return %c0_i32, %c0_i32_0 : i32, i32
  }
  func.func @transform_5(%arg0: i32) -> (i32, i32) {
    %c0_i32 = arith.constant 0 : i32
    %c0_i32_0 = arith.constant 0 : i32
    return %c0_i32, %arg0 : i32, i32
  }
}

</mosaic_0001>

<bundles_post_ra>
// kernel: tpu_custom_call.1
= control target key start
LH: loop header
LB: loop body
LE: loop exit
PB: predicated region body
PF: predicated region fallthrough
CT: control target
= control target key end

     0   :  { %10 = vsyncpa [#allocation3], 0  ;;  %s398_s0 = inlined_call_operand.hbm [shape: f32[2,8], index: 0, kind: input, shape index: {}]   ;;  %s399_s1 = inlined_call_operand.vmem [shape: f32[8,64], index: 1, kind: input, shape index: {}]   ;;  %s400_s2 = inlined_call_operand.hbm [shape: f32[1,64], index: 2, kind: input, shape index: {}]   ;;  %s401_s3 = inlined_call_operand.vmem [shape: f32[5,64], index: 3, kind: input, shape index: {}]   ;;  %s402_s4 = inlined_call_operand.vmem [shape: f32[5,1], index: 4, kind: input, shape index: {}]   ;;  %s403_s5 = inlined_call_operand.vmem [shape: f32[5,2], index: 5, kind: output, shape index: {}]  }
   0x1   :  { %11 = vsyncpa [#allocation5], 0  ;;  %s321_s18 = smov [#allocation2]   ;;  %s322_s20 = smov [#allocation4]  }
   0x2   :  { %s18_s19 = sshll.u32 %s321_s18, 4  ;;  %s30_s21 = sshll.u32 %s322_s20, 4  ;;  %s19_s19 = int_to_ptr.vmem [resolvable:$true] %s18_s19  ;;  %s31_s21 = int_to_ptr.vmem [resolvable:$true] %s30_s21 }
   0x3   :  { %s273_s24 = scalar_lea.hbm %s398_s0, 32 }
   0x4   :  { %p274_p0 = scmp.ne.s32.totalorder %s398_s0, %s273_s24  ;;  %p277_p1 = scmp.lt.u32.totalorder %s273_s24, %s398_s0 }
   0x6   :  { %p279_p2 = pnand %p277_p1, %p274_p0 }
   0x8   :  { %282 = shalt.err (!%p279_p2)
}
   0x9   :  { %s283_s29 = scalar_lea.vmem %s19_s19, 32  ;;  %p288_p4 = scmp.lt.s32.totalorder %s19_s19, %s19_s19 }
   0xa   :  { %p284_p3 = scmp.ne.s32.totalorder %s19_s19, %s283_s29  ;;  %p289_p5 = scmp.lt.s32.totalorder %s283_s29, %s283_s29 }
   0xc   :  { %p290_p6 = por %p289_p5, %p288_p4 }
   0xe   :  { %p291_p7 = pnand %p290_p6, %p284_p3 }
  0x10   :  { %294 = shalt.err (!%p291_p7)
}
  0x11   :  { %21 = dma.hbm_to_vmem [thread:$0]  %s398_s0, 32, %s19_s19, [#allocation3]  }
  0x12   :  { %s295_s9 = scalar_lea.hbm %s400_s2, 16 }
  0x13   :  { %p296_p8 = scmp.ne.s32.totalorder %s400_s2, %s295_s9  ;;  %p299_p9 = scmp.lt.u32.totalorder %s295_s9, %s400_s2 }
  0x15   :  { %p301_p10 = pnand %p299_p9, %p296_p8 }
  0x17   :  { %304 = shalt.err (!%p301_p10)
}
  0x18   :  { %s305_s14 = scalar_lea.vmem %s31_s21, 16  ;;  %s309_s15 = scalar_lea.vmem %s31_s21, 32 }
  0x19   :  { %p306_p11 = scmp.ne.s32.totalorder %s31_s21, %s305_s14  ;;  %p310_p12 = scmp.lt.s32.totalorder %s31_s21, %s31_s21 }
  0x1a   :  { %p311_p13 = scmp.lt.s32.totalorder %s309_s15, %s305_s14 }
  0x1c   :  { %p312_p0 = por %p311_p13, %p310_p12 }
  0x1e   :  { %p313_p1 = pnand %p312_p0, %p306_p11 }
  0x20   :  { %316 = shalt.err (!%p313_p1)
}
  0x21   :  { %33 = dma.hbm_to_vmem [thread:$0]  %s400_s2, 16, %s31_s21, [#allocation5]  }
  0x22   :  { %317 = dma.done.wait [#allocation3], 32  }
  0x23   :  { %318 = vsyncadd [#allocation3], 4294967264 }
  0x24   :  { %319 = dma.done.wait [#allocation5], 16  }
  0x25   :  { %320 = vsyncadd [#allocation5], 4294967280  ;;  %v323_v0 = vmov 0.0   ;;  %vm324_vm0 = vmmov 0   ;;  %vm53_vm1 = vcmask 64512   ;;  %v45_v1 = vld [vmem:[%s399_s1] sm:$0xff]  ;;  %v212_v11 = vlaneseq }
  0x26   :  { %253 = vmatprep.subr.mxu0 %v323_v0  ;;  %255 = vmatprep.mubr.msk.f32.mxu0 %vm324_vm0, %v323_v0  ;;  %v44_v2 = vld [vmem:[#allocation2] sm:$0x3]  ;;  %v325_v4 = vmov 0   ;;  %v245_v5 = vld [vmem:[#allocation4] ss:$0 sm:$0xff]  ;;  %vm135_vm2 = vcmask 523264  }
  0x27   :  { %258 = vmatprep.subr.mxu1 %v323_v0  ;;  %260 = vmatprep.mubr.msk.f32.mxu1 %vm324_vm0, %v323_v0  ;;  %v129_v3 = vld [vmem:[%s402_s4] sm:$0x1f]  ;;  %v213_v12 = vshrl.u32 %v212_v11, 7  ;;  %vm216_vm4 = vcmask 12288  }
  0x28   :  { %254 = vmatpush3.msra.mxu0 %v45_v1  ;;  %268 = vset.pattern.permute.xlu0 %v325_v4  ;;  %v128_v10 = vld [vmem:[%s401_s3] sm:$0x1f] }
  0x29   :  { %256 = vmatmul.mubr.msk.f32.vlgmr.msra.gmra.mrb[0].mxu0 %vm53_vm1, %v44_v2  ;;  %132 = vperm.xlu0 %268, %v129_v3   ;;  %vm214_vm3 = vcmp.lt.s32.totalorder %v213_v12, 4 }
  0xa8   :  { %v133_v13 = vpop.permute.xlu0 %132 }
  0xfc   :  { %v123_v6 = vpop.f32.mrb[0].mxu0 }
  0xfd   :  { %v124_v7 = vadd.f32 %v245_v5, %v123_v6  ;;  %v257_v8 = vpop.f32.mrb[1].mxu0 }
  0xff   :  { %v127_v9 = vmax.f32 %v124_v7, 0.0 }
 0x101   :  { %259 = vmatpush3.xpose.msk.msra.mxu1 %vm135_vm2, %v127_v9 }
 0x104   :  { %261 = vmatmul.mubr.msk.f32.vlgmr.msra.gmra.mrb[0].mxu1 %vm135_vm2, %v128_v10 }
 0x1d7   :  { %v208_v14 = vpop.f32.mrb[0].mxu1 }
 0x1d8   :  { %v209_v15 = vadd.f32 %v208_v14, %v133_v13  ;;  %v262_v16 = vpop.f32.mrb[1].mxu1 }
 0x1da   :  { %v215_v17 = vsel %vm214_vm3, %v209_v15, -inf }
 0x1db   :  { %v217_v18 = vsel %vm216_vm4, %v215_v17, -inf }
 0x1dc   :  { %v218_v19 = vrot.slane %v217_v18, 4 }
 0x1de   :  { %v219_v20 = vmax.f32 %v217_v18, %v218_v19 }
 0x1e0   :  { %v220_v21 = vrot.slane %v219_v20, 2 }
 0x1e2   :  { %v221_v22 = vmax.f32 %v219_v20, %v220_v21 }
 0x1e4   :  { %v222_v23 = vrot.slane %v221_v22, 1 }
 0x1e6   :  { %v223_v24 = vmax.f32 %v221_v22, %v222_v23 }
 0x1e8   :  { %v224_v25 = vsub.f32 %v209_v15, %v223_v24 }
 0x1ea   :  { %v225_v26 = vmul.f32 1.442695, %v224_v25 }
 0x1ec   :  { %269 = vpow2.f32 %v225_v26 }
 0x1f6   :  { %v270_v27 = vpop.eup %269 }
 0x1f7   :  { %v227_v28 = vsel %vm214_vm3, %v270_v27, 0.0 }
 0x1f8   :  { %v228_v29 = vsel %vm216_vm4, %v227_v28, 0.0 }
 0x1f9   :  { %v229_v30 = vrot.slane %v228_v29, 4 }
 0x1fb   :  { %v230_v31 = vadd.f32 %v229_v30, %v228_v29 }
 0x1fd   :  { %v231_v32 = vrot.slane %v230_v31, 2 }
 0x1ff   :  { %v232_v33 = vadd.f32 %v231_v32, %v230_v31 }
 0x201   :  { %v233_v34 = vrot.slane %v232_v33, 1 }
 0x203   :  { %v234_v35 = vadd.f32 %v233_v34, %v232_v33 }
 0x205   :  { %271 = vrcp.f32 %v234_v35 }
 0x20f   :  { %v272_v36 = vpop.eup %271 }
 0x210   :  { %v236_v37 = vmul.f32 %v272_v36, %v227_v28 }
 0x212   :  { %v237_v38 = vsel %vm214_vm3, %v236_v37, %v209_v15 }
 0x213   :  { %238 = vst.msk [vmem:[%s403_s5] sm:$0x1f] %vm216_vm4, %v237_v38 }
 0x214   :  { %243 = vsyncpa [#allocation3], 1 }
 0x215   :  { %244 = vsyncpa [#allocation5], 1 }

</bundles_post_ra>
